<compile_context>
chip_gen: v6e
topology: v6e:2x2x1
jax: 0.10.0
libtpu: 0.0.40
codegen_flags: <defaults>
</compile_context>

<pallas_src>
import functools

import jax
import jax.numpy as jnp
from jax.experimental import pallas as pl
from jax.experimental.pallas import tpu as pltpu


def _dice_kernel(pred_ref, target_ref, inter_ref, total_ref, inter_acc, total_acc,
                 *, d_total, tile_d, grid_d, grid_dj, n_split, need_mask):
    """One (sample-tile, D-split, D-tile) grid step.

    pred_ref/target_ref: (TILE_N, TILE_D) input tiles.
    inter_ref/total_ref: (TILE_N, 1) per-(sample, split) partial-sum outputs
                         (resident over the innermost D axis).
    inter_acc/total_acc: (TILE_N, 1) f32 VMEM accumulators.
    """
    s = pl.program_id(1)          # D-split index (parallel)
    j = pl.program_id(2)          # D-block index within this split (reduction)
    nj = pl.num_programs(2)       # == grid_dj
    jg = s * grid_dj + j          # global D-block index

    @pl.when(j == 0)
    def _():
        inter_acc[...] = jnp.zeros_like(inter_acc)
        total_acc[...] = jnp.zeros_like(total_acc)

    def _accumulate(masked):
        p = pred_ref[...].astype(jnp.float32)
        t = target_ref[...].astype(jnp.float32)
        if masked:
            # Only the single partial final D block runs this (off hot path).
            rem = d_total - (grid_d - 1) * tile_d
            col = jax.lax.broadcasted_iota(jnp.int32, (1, tile_d), 1)
            valid = col < rem
            p = jnp.where(valid, p, 0.0)
            t = jnp.where(valid, t, 0.0)
        # Dice only needs sum(p) + sum(t): reduce once on (p + t).
        inter_acc[...] += jnp.sum(p * t, axis=-1, keepdims=True)
        total_acc[...] += jnp.sum(p + t, axis=-1, keepdims=True)

    padded_blocks = n_split * grid_dj
    if not need_mask:
        if padded_blocks == grid_d:
            _accumulate(False)                      # hot path: no guards at all
        else:
            @pl.when(jg < grid_d)                   # skip the padded dup block
            def _():
                _accumulate(False)
    else:
        if grid_d == 1:
            _accumulate(True)
        else:
            @pl.when(jg < grid_d - 1)               # full blocks: unmasked
            def _():
                _accumulate(False)

            @pl.when(jg == grid_d - 1)              # single partial block: masked
            def _():
                _accumulate(True)

    @pl.when(j == nj - 1)
    def _():
        inter_ref[...] = inter_acc[...]
        total_ref[...] = total_acc[...]


def dice_loss(pred, target, *, target_block_bytes=2 * 1024 * 1024,
              max_tile_d=None, vmem_limit_bytes=32 * 1024 * 1024,
              input_buffering=2):
    """Pallas DiceLoss forward. pred/target: (N, C, H, W) (or any (N, ...))."""
    n = pred.shape[0]
    pred_flat = pred.reshape(n, -1)
    target_flat = target.reshape(n, -1)
    d = pred_flat.shape[1]
    assert target_flat.shape[1] == d, "pred/target must match per-sample size"

    # Row tile: fill the sublanes of the narrowest input dtype (8 rows f32,
    # 16 bf16, 32 int8/bool); use the full batch when it is smaller (legal block).
    def _row_align(dt):
        return 8 * max(1, 4 // jnp.dtype(dt).itemsize)

    row_align = max(_row_align(pred_flat.dtype), _row_align(target_flat.dtype))
    tile_n = n if n <= row_align else row_align

    # D tile: scale inversely with tile_n and dtype width so each input block
    # is ~target_block_bytes of DMA (>= ~2 MiB keeps the fixed per-step cost
    # to a few % even at v7x HBM bandwidth). Rounded to a 128 multiple.
    widest = max(jnp.dtype(pred_flat.dtype).itemsize,
                 jnp.dtype(target_flat.dtype).itemsize)
    elems_per_block = max(target_block_bytes // widest, 128 * tile_n)
    tile_d_cap = max(128, (elems_per_block // tile_n) // 128 * 128)
    if max_tile_d is not None:
        tile_d_cap = max(128, min(tile_d_cap, (max_tile_d // 128) * 128))

    if d <= tile_d_cap:
        tile_d, need_mask = d, False         # whole row: full-dim block is legal
    else:
        tile_d, need_mask = tile_d_cap, (d % tile_d_cap) != 0

    grid_n = pl.cdiv(n, tile_n)
    grid_d = pl.cdiv(d, tile_d)

    # v7x has 2 TensorCores: guarantee >= 2 parallel blocks.  If the sample
    # axis already provides them, keep a single D split; otherwise split the
    # D reduction into two independent halves combined in the wrapper.
    n_split = 2 if (grid_n == 1 and grid_d >= 2) else 1
    grid_dj = pl.cdiv(grid_d, n_split)
    n_pad = grid_n * tile_n   # rows >= n of the output are junk; sliced below.

    kernel = functools.partial(
        _dice_kernel, d_total=d, tile_d=tile_d, grid_d=grid_d,
        grid_dj=grid_dj, n_split=n_split, need_mask=need_mask)

    def in_index(i, s, j):
        # Clamp so the (possible) padded trailing block of the second split
        # stays in bounds; the kernel skips its accumulation.
        return (i, jnp.minimum(s * grid_dj + j, grid_d - 1))

    def out_index(i, s, j):
        return (s, i, 0)

    spec_kwargs = {}
    if input_buffering != 2:
        spec_kwargs["pipeline_mode"] = pl.Buffered(input_buffering)

    inter_parts, total_parts = pl.pallas_call(
        kernel,
        out_shape=(
            jax.ShapeDtypeStruct((n_split, n_pad, 1), jnp.float32),
            jax.ShapeDtypeStruct((n_split, n_pad, 1), jnp.float32),
        ),
        grid_spec=pltpu.PrefetchScalarGridSpec(
            num_scalar_prefetch=0,
            grid=(grid_n, n_split, grid_dj),
            in_specs=[
                pl.BlockSpec((tile_n, tile_d), in_index, **spec_kwargs),
                pl.BlockSpec((tile_n, tile_d), in_index, **spec_kwargs),
            ],
            out_specs=[
                pl.BlockSpec((None, tile_n, 1), out_index),
                pl.BlockSpec((None, tile_n, 1), out_index),
            ],
            scratch_shapes=[
                pltpu.VMEM((tile_n, 1), jnp.float32),   # sum(pred * target)
                pltpu.VMEM((tile_n, 1), jnp.float32),   # sum(pred) + sum(target)
            ],
        ),
        compiler_params=pltpu.CompilerParams(
            dimension_semantics=("parallel", "parallel", "arbitrary"),
            vmem_limit_bytes=vmem_limit_bytes,
        ),
    )(pred_flat, target_flat)

    # O(N) epilogue in the wrapper: slice off junk rows BEFORE any reduction,
    # combine D-split partials, then the dice division and mean.
    inter = inter_parts[:, :n, 0].sum(axis=0)
    total = total_parts[:, :n, 0].sum(axis=0)
    smooth = jnp.float32(1.0)
    dice = (2.0 * inter + smooth) / (total + smooth)
    return 1.0 - jnp.sum(dice) / n


def _dice_loss_ref(pred, target):
    """Pure-JAX reference mirroring the PyTorch forward exactly."""
    smooth = 1.0
    size = pred.shape[0]
    pred_ = pred.reshape(size, -1).astype(jnp.float32)
    target_ = target.reshape(size, -1).astype(jnp.float32)
    intersection = pred_ * target_
    dice_score = (2.0 * intersection.sum(1) + smooth) / (
        pred_.sum(1) + target_.sum(1) + smooth
    )
    return 1.0 - dice_score.sum() / size


if __name__ == "__main__":
    key = jax.random.PRNGKey(0)
    k1, k2, k3, k4, k5, k6, k7, k8 = jax.random.split(key, 8)

    # Test 1: basic NCHW case (f32); whole problem fits one grid step.
    N, C, H, W = 2, 4, 16, 16
    pred = jax.nn.sigmoid(jax.random.normal(k1, (N, C, H, W), dtype=jnp.float32))
    target = (jax.random.uniform(k2, (N, C, H, W)) > 0.5).astype(jnp.float32)
    loss = jax.block_until_ready(dice_loss(pred, target))
    ref = _dice_loss_ref(pred, target)
    assert jnp.allclose(loss, ref, rtol=1e-5, atol=1e-5), (loss, ref)

    # Test 2: bf16, D tiled (small cap) -> masked partial last tile + the 2-way
    # parallel D split (grid_n == 1, grid_d == 2).
    N2, C2, H2, W2 = 16, 3, 11, 13
    pred2 = jax.nn.sigmoid(
        jax.random.normal(k3, (N2, C2, H2, W2), dtype=jnp.float32)
    ).astype(jnp.bfloat16)
    target2 = (jax.random.uniform(k4, (N2, C2, H2, W2)) > 0.5).astype(jnp.bfloat16)
    loss2 = jax.block_until_ready(dice_loss(pred2, target2, max_tile_d=256))
    ref2 = _dice_loss_ref(pred2, target2)
    assert jnp.allclose(loss2, ref2, rtol=1e-3, atol=1e-3), (loss2, ref2)

    # Test 3: N not a multiple of the row tile (partial sample tile, f32,
    # grid_n == 2 so no D split).
    N3, C3, H3, W3 = 10, 1, 16, 24
    pred3 = jax.nn.sigmoid(jax.random.normal(k5, (N3, C3, H3, W3), dtype=jnp.float32))
    target3 = (jax.random.uniform(k6, (N3, C3, H3, W3)) > 0.5).astype(jnp.float32)
    loss3 = jax.block_until_ready(dice_loss(pred3, target3))
    ref3 = _dice_loss_ref(pred3, target3)
    assert jnp.allclose(loss3, ref3, rtol=1e-5, atol=1e-5), (loss3, ref3)

    # Test 4: odd number of D blocks with a partial final block AND the 2-way
    # D split (exercises the clamped/skipped padded block and the mask branch).
    N4, C4, H4, W4 = 4, 1, 16, 20   # d = 320, tile_d = 128 -> grid_d = 3
    pred4 = jax.nn.sigmoid(jax.random.normal(k7, (N4, C4, H4, W4), dtype=jnp.float32))
    target4 = (jax.random.uniform(k8, (N4, C4, H4, W4)) > 0.5).astype(jnp.float32)
    loss4 = jax.block_until_ready(dice_loss(pred4, target4, max_tile_d=128))
    ref4 = _dice_loss_ref(pred4, target4)
    assert jnp.allclose(loss4, ref4, rtol=1e-5, atol=1e-5), (loss4, ref4)

    print("KERNEL_OK")
</pallas_src>

<mosaic_0001>
module attributes {stable_mosaic.version = 11 : i64} {
  func.func @_dice_kernel(%arg0: i32, %arg1: i32, %arg2: i32, %arg3: memref<2x1024xf32, #tpu.memory_space<vmem>>, %arg4: memref<2x1024xf32, #tpu.memory_space<vmem>>, %arg5: memref<1x2x1xf32, #tpu.memory_space<vmem>>, %arg6: memref<1x2x1xf32, #tpu.memory_space<vmem>>, %arg7: memref<2x1xf32, #tpu.memory_space<vmem>>, %arg8: memref<2x1xf32, #tpu.memory_space<vmem>>) attributes {dimension_semantics = [#tpu.dimension_semantics<parallel>, #tpu.dimension_semantics<parallel>, #tpu.dimension_semantics<arbitrary>], iteration_bounds = array<i64: 1, 1, 1>, scalar_prefetch = 0 : i64, scratch_operands = 2 : i64, tpu.core_type = #tpu.core_type<tc>, window_params = [{transform_indices = @transform_0, window_bounds = array<i64: 2, 1024>}, {transform_indices = @transform_1, window_bounds = array<i64: 2, 1024>}, {transform_indices = @transform_2, window_bounds = array<i64: 1, 2, 1>}, {transform_indices = @transform_3, window_bounds = array<i64: 1, 2, 1>}]} {
    %c0_i32 = arith.constant 0 : i32
    %0 = arith.cmpi eq, %arg2, %c0_i32 : i32
    %1 = arith.extui %0 : i1 to i32
    %c0_i32_0 = arith.constant 0 : i32
    %2 = arith.cmpi ne, %1, %c0_i32_0 : i32
    scf.if %2 {
      %cst_15 = arith.constant 0.000000e+00 : f32
      %20 = vector.broadcast %cst_15 : f32 to vector<2x1xf32>
      %c0_16 = arith.constant 0 : index
      %c0_17 = arith.constant 0 : index
      %21 = vector.load %arg7[%c0_16, %c0_17] : memref<2x1xf32, #tpu.memory_space<vmem>>, vector<2x1xf32>
      tpu.vector_store %arg7[%c0_16, %c0_17], %20 {strides = array<i32>} : memref<2x1xf32, #tpu.memory_space<vmem>>, vector<2x1xf32>,
      %cst_18 = arith.constant 0.000000e+00 : f32
      %22 = vector.broadcast %cst_18 : f32 to vector<2x1xf32>
      %c0_19 = arith.constant 0 : index
      %c0_20 = arith.constant 0 : index
      %23 = vector.load %arg8[%c0_19, %c0_20] : memref<2x1xf32, #tpu.memory_space<vmem>>, vector<2x1xf32>
      tpu.vector_store %arg8[%c0_19, %c0_20], %22 {strides = array<i32>} : memref<2x1xf32, #tpu.memory_space<vmem>>, vector<2x1xf32>,
    } else {
    }
    %c0 = arith.constant 0 : index
    %c0_1 = arith.constant 0 : index
    %3 = vector.load %arg3[%c0, %c0_1] : memref<2x1024xf32, #tpu.memory_space<vmem>>, vector<2x1024xf32>
    %c0_2 = arith.constant 0 : index
    %c0_3 = arith.constant 0 : index
    %4 = vector.load %arg4[%c0_2, %c0_3] : memref<2x1024xf32, #tpu.memory_space<vmem>>, vector<2x1024xf32>
    %c0_4 = arith.constant 0 : index
    %c0_5 = arith.constant 0 : index
    %5 = vector.load %arg7[%c0_4, %c0_5] : memref<2x1xf32, #tpu.memory_space<vmem>>, vector<2x1xf32>
    %6 = arith.mulf %3, %4 : vector<2x1024xf32>
    %cst = arith.constant dense<0.000000e+00> : vector<2xf32>
    %7 = vector.multi_reduction <add>, %6, %cst [1] : vector<2x1024xf32> to vector<2xf32>
    %8 = vector.shape_cast %7 : vector<2xf32> to vector<2x1xf32>
    %9 = arith.addf %5, %8 : vector<2x1xf32>
    %c0_6 = arith.constant 0 : index
    %c0_7 = arith.constant 0 : index
    %10 = vector.load %arg7[%c0_6, %c0_7] : memref<2x1xf32, #tpu.memory_space<vmem>>, vector<2x1xf32>
    tpu.vector_store %arg7[%c0_6, %c0_7], %9 {strides = array<i32>} : memref<2x1xf32, #tpu.memory_space<vmem>>, vector<2x1xf32>,
    %c0_8 = arith.constant 0 : index
    %c0_9 = arith.constant 0 : index
    %11 = vector.load %arg8[%c0_8, %c0_9] : memref<2x1xf32, #tpu.memory_space<vmem>>, vector<2x1xf32>
    %12 = arith.addf %3, %4 : vector<2x1024xf32>
    %cst_10 = arith.constant dense<0.000000e+00> : vector<2xf32>
    %13 = vector.multi_reduction <add>, %12, %cst_10 [1] : vector<2x1024xf32> to vector<2xf32>
    %14 = vector.shape_cast %13 : vector<2xf32> to vector<2x1xf32>
    %15 = arith.addf %11, %14 : vector<2x1xf32>
    %c0_11 = arith.constant 0 : index
    %c0_12 = arith.constant 0 : index
    %16 = vector.load %arg8[%c0_11, %c0_12] : memref<2x1xf32, #tpu.memory_space<vmem>>, vector<2x1xf32>
    tpu.vector_store %arg8[%c0_11, %c0_12], %15 {strides = array<i32>} : memref<2x1xf32, #tpu.memory_space<vmem>>, vector<2x1xf32>,
    %c0_i32_13 = arith.constant 0 : i32
    %17 = arith.cmpi eq, %arg2, %c0_i32_13 : i32
    %18 = arith.extui %17 : i1 to i32
    %c0_i32_14 = arith.constant 0 : i32
    %19 = arith.cmpi ne, %18, %c0_i32_14 : i32
    scf.if %19 {
      %c0_15 = arith.constant 0 : index
      %c0_16 = arith.constant 0 : index
      %20 = vector.load %arg7[%c0_15, %c0_16] : memref<2x1xf32, #tpu.memory_space<vmem>>, vector<2x1xf32>
      %c0_17 = arith.constant 0 : index
      %c0_18 = arith.constant 0 : index
      %c0_19 = arith.constant 0 : index
      %21 = vector.load %arg5[%c0_17, %c0_18, %c0_19] : memref<1x2x1xf32, #tpu.memory_space<vmem>>, vector<1x2x1xf32>
      %22 = vector.shape_cast %21 : vector<1x2x1xf32> to vector<2x1xf32>
      %23 = vector.shape_cast %20 : vector<2x1xf32> to vector<1x2x1xf32>
      tpu.vector_store %arg5[%c0_17, %c0_18, %c0_19], %23 {strides = array<i32>} : memref<1x2x1xf32, #tpu.memory_space<vmem>>, vector<1x2x1xf32>,
      %c0_20 = arith.constant 0 : index
      %c0_21 = arith.constant 0 : index
      %24 = vector.load %arg8[%c0_20, %c0_21] : memref<2x1xf32, #tpu.memory_space<vmem>>, vector<2x1xf32>
      %c0_22 = arith.constant 0 : index
      %c0_23 = arith.constant 0 : index
      %c0_24 = arith.constant 0 : index
      %25 = vector.load %arg6[%c0_22, %c0_23, %c0_24] : memref<1x2x1xf32, #tpu.memory_space<vmem>>, vector<1x2x1xf32>
      %26 = vector.shape_cast %25 : vector<1x2x1xf32> to vector<2x1xf32>
      %27 = vector.shape_cast %24 : vector<2x1xf32> to vector<1x2x1xf32>
      tpu.vector_store %arg6[%c0_22, %c0_23, %c0_24], %27 {strides = array<i32>} : memref<1x2x1xf32, #tpu.memory_space<vmem>>, vector<1x2x1xf32>,
    } else {
    }
    return
  }
  func.func @transform_0(%arg0: i32, %arg1: i32, %arg2: i32) -> (i32, i32) {
    %c1_i32 = arith.constant 1 : i32
    %0 = arith.muli %arg1, %c1_i32 : i32
    %1 = arith.addi %0, %arg2 : i32
    %c0_i32 = arith.constant 0 : i32
    %2 = arith.minsi %1, %c0_i32 : i32
    %c0_i32_0 = arith.constant 0 : i32
    return %arg0, %2 : i32, i32
  }
  func.func @transform_1(%arg0: i32, %arg1: i32, %arg2: i32) -> (i32, i32) {
    %c1_i32 = arith.constant 1 : i32
    %0 = arith.muli %arg1, %c1_i32 : i32
    %1 = arith.addi %0, %arg2 : i32
    %c0_i32 = arith.constant 0 : i32
    %2 = arith.minsi %1, %c0_i32 : i32
    %c0_i32_0 = arith.constant 0 : i32
    return %arg0, %2 : i32, i32
  }
  func.func @transform_2(%arg0: i32, %arg1: i32, %arg2: i32) -> (i32, i32, i32) {
    %c0_i32 = arith.constant 0 : i32
    %c0_i32_0 = arith.constant 0 : i32
    return %arg1, %arg0, %c0_i32 : i32, i32, i32
  }
  func.func @transform_3(%arg0: i32, %arg1: i32, %arg2: i32) -> (i32, i32, i32) {
    %c0_i32 = arith.constant 0 : i32
    %c0_i32_0 = arith.constant 0 : i32
    return %arg1, %arg0, %c0_i32 : i32, i32, i32
  }
}

</mosaic_0001>

<bundles_post_ra>
// kernel: tpu_custom_call.1
= control target key start
LH: loop header
LB: loop body
LE: loop exit
PB: predicated region body
PF: predicated region fallthrough
CT: control target
= control target key end

     0   :  { %9 = vsyncpa [#allocation5], 0  ;;  %s329_s0 = inlined_call_operand.hbm [shape: f32[2,1024], index: 0, kind: input, shape index: {}]   ;;  %s330_s1 = inlined_call_operand.hbm [shape: f32[2,1024], index: 1, kind: input, shape index: {}]   ;;  %s331_s2 = inlined_call_operand.vmem [shape: f32[1,2,1], index: 2, kind: output, shape index: {0}]   ;;  %s332_s3 = inlined_call_operand.vmem [shape: f32[1,2,1], index: 3, kind: output, shape index: {1}]  }
   0x1   :  { %10 = vsyncpa [#allocation7], 0  ;;  %s271_s12 = smov [#allocation4]   ;;  %s272_s14 = smov [#allocation6]  }
   0x2   :  { %s23_s13 = sshll.u32 %s271_s12, 4  ;;  %s39_s15 = sshll.u32 %s272_s14, 4  ;;  %s24_s13 = int_to_ptr.vmem [resolvable:$true] %s23_s13  ;;  %s40_s15 = int_to_ptr.vmem [resolvable:$true] %s39_s15 }
   0x3   :  { %s235_s16 = scalar_lea.vmem %s24_s13, 256  ;;  %p240_p1 = scmp.lt.s32.totalorder %s24_s13, %s24_s13 }
   0x4   :  { %p236_p0 = scmp.ne.s32.totalorder %s24_s13, %s235_s16  ;;  %p241_p2 = scmp.lt.s32.totalorder %s235_s16, %s235_s16 }
   0x6   :  { %p242_p3 = por %p241_p2, %p240_p1 }
   0x8   :  { %p243_p4 = pnand %p242_p3, %p236_p0 }
   0xa   :  { %246 = shalt.err (!%p243_p4)
}
   0xb   :  { %26 = dma.hbm_to_vmem [thread:$0]  %s329_s0, 256, %s24_s13, [#allocation5]  }
   0xc   :  { %s255_s19 = scalar_lea.vmem %s40_s15, 256  ;;  %p260_p6 = scmp.lt.s32.totalorder %s40_s15, %s40_s15 }
   0xd   :  { %p256_p5 = scmp.ne.s32.totalorder %s40_s15, %s255_s19  ;;  %p261_p7 = scmp.lt.s32.totalorder %s255_s19, %s255_s19 }
   0xf   :  { %p262_p8 = por %p261_p7, %p260_p6 }
  0x11   :  { %p263_p9 = pnand %p262_p8, %p256_p5 }
  0x13   :  { %266 = shalt.err (!%p263_p9)
}
  0x14   :  { %42 = dma.hbm_to_vmem [thread:$0]  %s330_s1, 256, %s40_s15, [#allocation7]  }
  0x15   :  { %267 = dma.done.wait [#allocation5], 256  }
  0x16   :  { %268 = vsyncadd [#allocation5], 4294967040 }
  0x17   :  { %269 = dma.done.wait [#allocation7], 256  }
  0x18   :  { %270 = vsyncadd [#allocation7], 4294967040  ;;  %v77_v0 = vlaneseq  ;;  %vm61_vm0 = vcmask 1024   ;;  %v273_v1 = vmov 1983009808   ;;  %v274_v4 = vmov 0.0  }
  0x19   :  { %v75_v2 = vunpack.c.l.s4 %v273_v1  ;;  %62 = vst.msk [vmem:[#allocation2] sm:$0x3] %vm61_vm0, %v274_v4  ;;  %63 = vst.msk [vmem:[#allocation3] sm:$0x3] %vm61_vm0, %v274_v4  ;;  %v64_v7 = vld [vmem:[#allocation4] sm:$0xff]  ;;  %v65_v8 = vld [vmem:[#allocation4 + $0x8] sm:$0xff] }
  0x1a   :  { %v78_v3 = vshrl.u32 %v77_v0, 7  ;;  %v66_v9 = vld [vmem:[#allocation6] sm:$0xff]  ;;  %v67_v10 = vld [vmem:[#allocation6 + $0x8] sm:$0xff]  ;;  %vm115_vm1 = vcmask 1041408  }
  0x1b   :  { %v76_v5 = vunpack.c.0.s8 %v75_v2  ;;  %v69_v11 = vmul.f32 %v66_v9, %v64_v7  ;;  %v137_v12 = vadd.f32 %v66_v9, %v64_v7  ;;  %v70_v13 = vmul.f32 %v67_v10, %v65_v8 }
  0x1c   :  { %v138_v20 = vadd.f32 %v67_v10, %v65_v8 }
  0x1d   :  { %v79_v6 = vsub.s32 %v76_v5, %v78_v3  ;;  %v73_v14 = vcombine.high %v69_v11, %v69_v11  ;;  %v141_v16 = vcombine.high %v137_v12, %v137_v12  ;;  %v90_v18 = vcombine.high %v70_v13, %v70_v13 }
  0x1e   :  { %v158_v31 = vcombine.high %v138_v20, %v138_v20 }
  0x1f   :  { %v80_v15 = vrot.slane %v69_v11, %v79_v6  ;;  %v148_v17 = vrot.slane %v137_v12, %v79_v6  ;;  %v97_v19 = vrot.slane %v70_v13, %v79_v6  ;;  %v87_v21 = vrot.slane %v73_v14, %v79_v6 }
  0x20   :  { %v155_v24 = vrot.slane %v141_v16, %v79_v6  ;;  %v165_v32 = vrot.slane %v138_v20, %v79_v6  ;;  %v104_v33 = vrot.slane %v90_v18, %v79_v6  ;;  %v172_v43 = vrot.slane %v158_v31, %v79_v6  ;;  %v68_v1 = vld [vmem:[#allocation2] sm:$0x3]  ;;  %v136_v4 = vld [vmem:[#allocation3] sm:$0x3] }
  0x21   :  { %v88_v22 = vcombine.high %v80_v15, %v80_v15  ;;  %v116_v23 = vsel %vm115_vm1, %v80_v15, 0.0  ;;  %v156_v25 = vcombine.high %v148_v17, %v148_v17  ;;  %v89_v26 = vcombine.high %v87_v21, %v87_v21 }
  0x22   :  { %v119_v28 = vsel %vm115_vm1, %v87_v21, 0.0  ;;  %v157_v30 = vcombine.high %v155_v24, %v155_v24  ;;  %v105_v34 = vcombine.high %v97_v19, %v97_v19  ;;  %v183_v36 = vsel %vm115_vm1, %v148_v17, 0.0 }
  0x23   :  { %v117_v27 = vsel %vm115_vm1, %v88_v22, 0.0  ;;  %v121_v35 = vsel %vm115_vm1, %v89_v26, 0.0  ;;  %v184_v38 = vsel %vm115_vm1, %v156_v25, 0.0  ;;  %v186_v39 = vsel %vm115_vm1, %v155_v24, 0.0 }
  0x24   :  { %v118_v29 = vadd.f32 %v117_v27, %v116_v23  ;;  %v123_v40 = vsel %vm115_vm1, %v97_v19, 0.0  ;;  %v185_v41 = vadd.f32 %v184_v38, %v183_v36  ;;  %v173_v44 = vcombine.high %v165_v32, %v165_v32 }
  0x25   :  { %v188_v45 = vsel %vm115_vm1, %v157_v30, 0.0  ;;  %v106_v46 = vcombine.high %v104_v33, %v104_v33  ;;  %v125_v47 = vsel %vm115_vm1, %v105_v34, 0.0  ;;  %v190_v50 = vsel %vm115_vm1, %v165_v32, 0.0 }
  0x26   :  { %v120_v37 = vadd.f32 %v119_v28, %v118_v29  ;;  %v187_v48 = vadd.f32 %v186_v39, %v185_v41  ;;  %v127_v51 = vsel %vm115_vm1, %v104_v33, 0.0  ;;  %v174_v54 = vcombine.high %v172_v43, %v172_v43 }
  0x27   :  { %v192_v55 = vsel %vm115_vm1, %v173_v44, 0.0  ;;  %v129_v56 = vsel %vm115_vm1, %v106_v46, 0.0  ;;  %v194_v59 = vsel %vm115_vm1, %v172_v43, 0.0 }
  0x28   :  { %v122_v42 = vadd.f32 %v121_v35, %v120_v37  ;;  %v189_v52 = vadd.f32 %v188_v45, %v187_v48  ;;  %v196_v62 = vsel %vm115_vm1, %v174_v54, 0.0 }
  0x2a   :  { %v124_v49 = vadd.f32 %v123_v40, %v122_v42  ;;  %v191_v57 = vadd.f32 %v190_v50, %v189_v52 }
  0x2c   :  { %v126_v53 = vadd.f32 %v125_v47, %v124_v49  ;;  %v193_v60 = vadd.f32 %v192_v55, %v191_v57 }
  0x2e   :  { %v128_v58 = vadd.f32 %v127_v51, %v126_v53  ;;  %v195_v63 = vadd.f32 %v194_v59, %v193_v60 }
  0x30   :  { %v130_v61 = vadd.f32 %v129_v56, %v128_v58  ;;  %v197_v0 = vadd.f32 %v196_v62, %v195_v63 }
  0x32   :  { %131 = vadd.xlane.f32.xlu0 %v130_v61 }
  0x36   :  { %198 = vadd.xlane.f32.xlu0 %v197_v0 }
  0xbb   :  { %v132_v2 = vpop.xlane.xlu0 %131 }
  0xbc   :  { %v133_v3 = vadd.f32 %v132_v2, %v68_v1 }
  0xbe   :  { %135 = vst.msk [vmem:[#allocation2] sm:$0x3] %vm61_vm0, %v133_v3 }
  0xbf   :  { %v199_v5 = vpop.xlane.xlu0 %198 }
  0xc0   :  { %v200_v6 = vadd.f32 %v199_v5, %v136_v4 }
  0xc2   :  { %201 = vst.msk [vmem:[#allocation3] sm:$0x3] %vm61_vm0, %v200_v6 }
  0xc5   :  { %v205_v7 = vld [vmem:[#allocation2] sm:$0x3] }
  0xc6   :  { %206 = vst.msk [vmem:[%s331_s2] sm:$0x3] %vm61_vm0, %v205_v7 }
  0xc9   :  { %v207_v8 = vld [vmem:[#allocation3] sm:$0x3] }
  0xca   :  { %208 = vst.msk [vmem:[%s332_s3] sm:$0x3] %vm61_vm0, %v207_v8 }
  0xcb   :  { %217 = vsyncpa [#allocation5], 1 }
  0xcc   :  { %218 = vsyncpa [#allocation7], 1 }

</bundles_post_ra>
